<compile_context>
chip_gen: v5e
topology: v5e:2x2
jax: 0.10.0
libtpu: 0.0.40
codegen_flags: <defaults>
</compile_context>

<pallas_src>
import jax
import jax.numpy as jnp
from jax.experimental import pallas as pl
from jax.experimental.pallas import tpu as pltpu

# ----------------------------- configuration --------------------------------
MODEL = "rand"
BATCH_SIZE = 2
MAX_SENT_LEN = 16
WORD_DIM = 32
VOCAB_SIZE = 50
CLASS_SIZE = 4
FILTERS = (3, 4, 5)
FILTER_NUM = (16, 16, 16)
DROPOUT_PROB = 0.5  # eval mode -> dropout is identity

# ------------------------- fused-kernel layout constants ---------------------
F_MAX = max(FILTERS)                     # 5   (widest filter)
T_PAD = 16                               # conv positions, padded 14 -> 16 (8-aligned)
L_PAD = T_PAD + F_MAX - 1                # 20  (padded sentence length for im2col)
K_FUSED = F_MAX * WORD_DIM               # 160 (fused contraction depth)
N_SUM = sum(FILTER_NUM)                  # 48  (real output channels)
N_PAD = 128                              # lane-dense padded channels / FC lanes

# aux blob (f32) row layout: bias row at 0, validity mask rows start at 8
ROW_B = 0
ROW_MASK = 8
AUX_ROWS = ROW_MASK + T_PAD              # 24
FC_ROWS = N_PAD + 8                      # 136 (128 weight rows + bias row at 128, padded)


# ------------------------------- kernel -------------------------------------
def cnn_kernel(x_ref, w_ref, aux_ref, fc_ref, out_ref):
    """Fused conv (single bf16 matmul) + bias + ReLU + masked max-pool + FC."""
    x = x_ref[...]                                             # (B*T_PAD, 160) bf16
    w = w_ref[...]                                             # (160, 128)     bf16

    # One MXU pass covers all filters / all conv positions; f32 accumulation.
    conv = jnp.dot(x, w, preferred_element_type=jnp.float32)   # (B*T_PAD, 128) f32

    bias = aux_ref[ROW_B:ROW_B + 1, :]                         # (1, 128)  f32
    mask = aux_ref[ROW_MASK:ROW_MASK + T_PAD, :]               # (16, 128) f32 0/1
    conv = jnp.maximum(conv + bias, 0.0)                       # bias + ReLU

    # Zero invalid positions (t >= T_i) per filter AFTER ReLU (exact, outputs>=0),
    # then one tile-aligned sublane reduction = max-pool + concat of all filters.
    conv = conv.reshape(BATCH_SIZE, T_PAD, N_PAD) * mask[None, :, :]
    pooled = jnp.max(conv, axis=1)                             # (B, 128) f32

    # TODO(synk): dropout omitted (training=False -> F.dropout is identity).
    fc_w = fc_ref[0:N_PAD, :]                                  # (128, 128) f32
    fc_b = fc_ref[N_PAD:N_PAD + 1, :]                          # (1, 128)   f32
    out_ref[...] = (
        jnp.dot(pooled, fc_w, preferred_element_type=jnp.float32) + fc_b
    )                                                          # (B, 128) lane-dense


# ------------------------------ wrapper --------------------------------------
def im2col(x_emb):
    """Wrapper-side layout plumbing: (B,L,D) f32 -> lane-dense (B*T_PAD,160) bf16."""
    zpad = jnp.zeros((BATCH_SIZE, L_PAD - MAX_SENT_LEN, WORD_DIM), x_emb.dtype)
    x_pad = jnp.concatenate([x_emb, zpad], axis=1)              # (B, L_PAD, D)
    x_unf = jnp.concatenate(
        [x_pad[:, k:k + T_PAD, :] for k in range(F_MAX)], axis=-1
    )                                                           # (B, T_PAD, F_MAX*D)
    return x_unf.reshape(BATCH_SIZE * T_PAD, K_FUSED).astype(jnp.bfloat16)


_COST = pl.CostEstimate(
    flops=2 * (BATCH_SIZE * T_PAD) * K_FUSED * N_PAD + 2 * BATCH_SIZE * N_PAD * N_PAD,
    transcendentals=0,
    bytes_accessed=(BATCH_SIZE * T_PAD * K_FUSED * 2      # x_col bf16
                    + K_FUSED * N_PAD * 2                 # conv weight bf16
                    + AUX_ROWS * N_PAD * 4                # bias + mask f32
                    + FC_ROWS * N_PAD * 4                 # fc blob f32
                    + BATCH_SIZE * N_PAD * 4),            # output f32
)


@jax.jit
def cnn_forward(x_emb, w_blob, aux_blob, fc_blob):
    x_col = im2col(x_emb)
    vmem = pl.BlockSpec(memory_space=pltpu.MemorySpace.VMEM)
    out_pad = pl.pallas_call(
        cnn_kernel,
        out_shape=jax.ShapeDtypeStruct((BATCH_SIZE, N_PAD), jnp.float32),
        in_specs=[vmem, vmem, vmem, vmem],
        out_specs=vmem,
        cost_estimate=_COST,
    )(x_col, w_blob, aux_blob, fc_blob)
    return out_pad[:, :CLASS_SIZE]


# --------------------------- host-side param packing -------------------------
def pack_params(conv_ws, conv_bs, fc_w_t, fc_b):
    """Pack (w0,b0,w1,b1,w2,b2,fcw,fcb) into 3 lane-dense operands."""
    w_blob = jnp.zeros((K_FUSED, N_PAD), jnp.float32)
    aux = jnp.zeros((AUX_ROWS, N_PAD), jnp.float32)
    col = 0
    for i, f in enumerate(FILTERS):
        fn = FILTER_NUM[i]
        t_i = MAX_SENT_LEN - f + 1
        w_flat = conv_ws[i].reshape(f * WORD_DIM, fn)           # rows = k*D + d
        w_blob = w_blob.at[0:f * WORD_DIM, col:col + fn].set(w_flat)
        aux = aux.at[ROW_B, col:col + fn].set(conv_bs[i].reshape(fn))
        aux = aux.at[ROW_MASK:ROW_MASK + t_i, col:col + fn].set(1.0)
        col += fn

    fc_blob = jnp.zeros((FC_ROWS, N_PAD), jnp.float32)
    fc_blob = fc_blob.at[0:N_SUM, 0:CLASS_SIZE].set(fc_w_t)
    fc_blob = fc_blob.at[N_PAD, 0:CLASS_SIZE].set(fc_b.reshape(CLASS_SIZE))
    return w_blob.astype(jnp.bfloat16), aux, fc_blob


# --------------------------- pure-JAX f32 reference --------------------------
def reference(x_emb, conv_ws, conv_bs, fc_w_t, fc_b):
    feats = []
    for i, f in enumerate(FILTERS):
        T = MAX_SENT_LEN - f + 1
        conv = jnp.zeros((BATCH_SIZE, T, FILTER_NUM[i]), jnp.float32)
        for k in range(f):
            conv = conv + jnp.einsum("btd,dc->btc", x_emb[:, k:k + T, :], conv_ws[i][k])
        conv = jax.nn.relu(conv + conv_bs[i][:, None, :])
        feats.append(jnp.max(conv, axis=1))
    feat = jnp.concatenate(feats, axis=1)
    return feat @ fc_w_t + fc_b


# -------------------------------- main ---------------------------------------
if __name__ == "__main__":
    key = jax.random.PRNGKey(0)
    keys = jax.random.split(key, 12)

    # Embedding table (nn.Embedding(VOCAB+2, D, padding_idx=VOCAB+1)).
    emb_table = jax.random.normal(keys[0], (VOCAB_SIZE + 2, WORD_DIM), jnp.float32)
    emb_table = emb_table.at[VOCAB_SIZE + 1].set(0.0)  # padding row

    # Conv1d parameters; PyTorch weight shape (FN, 1, D*f) -> kernel layout (f, D, FN).
    conv_ws, conv_bs = [], []
    for i, f in enumerate(FILTERS):
        fan_in = WORD_DIM * f
        bound = 1.0 / (fan_in ** 0.5)
        w = jax.random.uniform(keys[1 + i], (FILTER_NUM[i], 1, WORD_DIM * f),
                               minval=-bound, maxval=bound, dtype=jnp.float32)
        b = jax.random.uniform(keys[4 + i], (FILTER_NUM[i],),
                               minval=-bound, maxval=bound, dtype=jnp.float32)
        w_kdn = jnp.transpose(w.reshape(FILTER_NUM[i], f, WORD_DIM), (1, 2, 0))
        conv_ws.append(w_kdn)                      # (f, D, FN_i)
        conv_bs.append(b.reshape(1, FILTER_NUM[i]))

    # Linear(sum(FILTER_NUM) -> CLASS_SIZE); weight used pre-transposed.
    bound_fc = 1.0 / (N_SUM ** 0.5)
    fc_w = jax.random.uniform(keys[7], (CLASS_SIZE, N_SUM),
                              minval=-bound_fc, maxval=bound_fc, dtype=jnp.float32)
    fc_b = jax.random.uniform(keys[8], (CLASS_SIZE,),
                              minval=-bound_fc, maxval=bound_fc, dtype=jnp.float32)
    fc_w_t = fc_w.T                               # (sum_fn, CLASS)

    # Token ids and embedding lookup (gather is glue, kept in plain JAX).
    inp = jax.random.randint(keys[9], (BATCH_SIZE, MAX_SENT_LEN), 0, VOCAB_SIZE,
                             dtype=jnp.int32)
    x_emb = emb_table[inp]                        # (B, L, D)

    w_blob, aux_blob, fc_blob = pack_params(conv_ws, conv_bs, fc_w_t, fc_b)

    out = cnn_forward(x_emb, w_blob, aux_blob, fc_blob)
    out = jax.block_until_ready(out)

    ref = reference(x_emb, conv_ws, conv_bs, fc_w_t, fc_b)
    assert out.shape == (BATCH_SIZE, CLASS_SIZE)
    # bf16 MXU inputs with f32 accumulation -> relaxed tolerance vs the pure-f32
    # reference (expected error ~1e-3 at output scale ~0.5; structural bugs are
    # O(0.5) and still caught).
    assert jnp.allclose(out, ref, rtol=3e-2, atol=3e-2), "mismatch vs JAX reference"

    print("KERNEL_OK")
</pallas_src>

<mosaic_0001>
module attributes {stable_mosaic.version = 11 : i64} {
  func.func @cnn_kernel(%arg0: memref<32x160xbf16, #tpu.memory_space<vmem>>, %arg1: memref<160x128xbf16, #tpu.memory_space<vmem>>, %arg2: memref<24x128xf32, #tpu.memory_space<vmem>>, %arg3: memref<136x128xf32, #tpu.memory_space<vmem>>, %arg4: memref<2x128xf32, #tpu.memory_space<vmem>>) attributes {dimension_semantics = [], scalar_prefetch = 0 : i64, scratch_operands = 0 : i64, tpu.core_type = #tpu.core_type<tc>} {
    %c0 = arith.constant 0 : index
    %c0_0 = arith.constant 0 : index
    %0 = vector.load %arg0[%c0, %c0_0] : memref<32x160xbf16, #tpu.memory_space<vmem>>, vector<32x160xbf16>
    %c0_1 = arith.constant 0 : index
    %c0_2 = arith.constant 0 : index
    %1 = vector.load %arg1[%c0_1, %c0_2] : memref<160x128xbf16, #tpu.memory_space<vmem>>, vector<160x128xbf16>
    %cst = arith.constant dense<0.000000e+00> : vector<32x128xf32>
    %2 = tpu.matmul %0, %1, %cst {dimension_numbers = #tpu.dot_dimension_numbers<[1], [0], [0], [1], [0, 0, 1, 1], [], []>} : vector<32x160xbf16>, vector<160x128xbf16>, vector<32x128xf32> -> vector<32x128xf32>
    %c0_3 = arith.constant 0 : index
    %c0_4 = arith.constant 0 : index
    %3 = vector.load %arg2[%c0_3, %c0_4] : memref<24x128xf32, #tpu.memory_space<vmem>>, vector<1x128xf32>
    %c8 = arith.constant 8 : index
    %c0_5 = arith.constant 0 : index
    %4 = vector.load %arg2[%c8, %c0_5] : memref<24x128xf32, #tpu.memory_space<vmem>>, vector<16x128xf32>
    %5 = vector.broadcast %3 : vector<1x128xf32> to vector<32x128xf32>
    %6 = arith.addf %2, %5 : vector<32x128xf32>
    %cst_6 = arith.constant 0.000000e+00 : f32
    %7 = vector.broadcast %cst_6 : f32 to vector<32x128xf32>
    %8 = arith.maximumf %6, %7 : vector<32x128xf32>
    %9 = vector.shape_cast %8 : vector<32x128xf32> to vector<2x16x128xf32>
    %10 = vector.shape_cast %4 : vector<16x128xf32> to vector<1x16x128xf32>
    %11 = vector.broadcast %10 : vector<1x16x128xf32> to vector<2x16x128xf32>
    %12 = arith.mulf %9, %11 : vector<2x16x128xf32>
    %cst_7 = arith.constant dense<0xFF800000> : vector<2x128xf32>
    %13 = vector.multi_reduction <maximumf>, %12, %cst_7 [1] : vector<2x16x128xf32> to vector<2x128xf32>
    %c0_8 = arith.constant 0 : index
    %c0_9 = arith.constant 0 : index
    %14 = vector.load %arg3[%c0_8, %c0_9] : memref<136x128xf32, #tpu.memory_space<vmem>>, vector<128x128xf32>
    %c128 = arith.constant 128 : index
    %c0_10 = arith.constant 0 : index
    %15 = vector.load %arg3[%c128, %c0_10] : memref<136x128xf32, #tpu.memory_space<vmem>>, vector<1x128xf32>
    %cst_11 = arith.constant dense<0.000000e+00> : vector<2x128xf32>
    %16 = tpu.matmul %13, %14, %cst_11 {dimension_numbers = #tpu.dot_dimension_numbers<[1], [0], [0], [1], [0, 0, 1, 1], [], []>} : vector<2x128xf32>, vector<128x128xf32>, vector<2x128xf32> -> vector<2x128xf32>
    %17 = vector.broadcast %15 : vector<1x128xf32> to vector<2x128xf32>
    %18 = arith.addf %16, %17 : vector<2x128xf32>
    %c0_12 = arith.constant 0 : index
    %c0_13 = arith.constant 0 : index
    %19 = vector.load %arg4[%c0_12, %c0_13] : memref<2x128xf32, #tpu.memory_space<vmem>>, vector<2x128xf32>
    tpu.vector_store %arg4[%c0_12, %c0_13], %18 {strides = array<i32>} : memref<2x128xf32, #tpu.memory_space<vmem>>, vector<2x128xf32>,
    return
  }
}

</mosaic_0001>

<bundles_post_ra>
// kernel: cnn_forward.1
= control target key start
LH: loop header
LB: loop body
LE: loop exit
PB: predicated region body
PF: predicated region fallthrough
CT: control target
= control target key end

     0   :  { %s506_s0 = inlined_call_operand.vmem [shape: bf16[32,160], index: 0, kind: input, shape index: {}]   ;;  %s507_s1 = inlined_call_operand.vmem [shape: bf16[160,128], index: 1, kind: input, shape index: {}]   ;;  %s508_s2 = inlined_call_operand.vmem [shape: f32[24,128], index: 2, kind: input, shape index: {}]   ;;  %s509_s3 = inlined_call_operand.vmem [shape: f32[136,128], index: 3, kind: input, shape index: {}]   ;;  %s510_s4 = inlined_call_operand.hbm [shape: f32[2,128], index: 4, kind: output, shape index: {}]  }
   0x1   :  { %v321_v0 = vld [vmem:[%s507_s1 + $0x38] sm:$0xff]  ;;  %v323_v1 = vld [vmem:[%s507_s1 + $0x48] sm:$0xff]  ;;  %v320_v2 = vld [vmem:[%s507_s1 + $0x30] sm:$0xff] }
   0x2   :  { %132 = vmatpush.bf16.msra.mxu0 %v321_v0  ;;  %324 = vmatpush.bf16.msra.mxu3 %v321_v0  ;;  %v322_v3 = vld [vmem:[%s507_s1 + $0x40] sm:$0xff]  ;;  %v256_v5 = vld [vmem:[%s506_s0 + $0x8] sm:$0xf0] }
   0x3   :  { %157 = vmatpush.bf16.msra.mxu1 %v323_v1  ;;  %v310_v4 = vld [vmem:[%s506_s0 + $0x4] sm:$0xf]  ;;  %v319_v6 = vld [vmem:[%s507_s1 + $0x28] sm:$0xff] }
   0x6   :  { %133 = vmatpush.bf16.msra.mxu0 %v320_v2  ;;  %325 = vmatpush.bf16.msra.mxu3 %v320_v2 }
   0x7   :  { %9 = vsyncpa [#allocation3], 0  ;;  %158 = vmatpush.bf16.msra.mxu1 %v322_v3  ;;  %v259_v7 = vor.u32 %v310_v4, %v256_v5  ;;  %vm125_vm0 = vcmask 261120   ;;  %v318_v8 = vld [vmem:[%s507_s1 + $0x20] sm:$0xff]  ;;  %v317_v9 = vld [vmem:[%s507_s1 + $0x18] sm:$0xff]  ;;  %vm212_vm1 = vcmask 1041409  }
   0x8   :  { %v316_v10 = vld [vmem:[%s507_s1 + $0x10] sm:$0xff]  ;;  %v264_v12 = vld [vmem:[%s506_s0 + $0x18] sm:$0xf0]  ;;  %v315_v13 = vld [vmem:[%s507_s1 + $0x8] sm:$0xff]  ;;  %s361_s8 = smov [#allocation2]   ;;  %s243_s12 = sshll.u32 %s510_s4, 4  ;;  %s244_s12 = int_to_ptr.hbm [resolvable:$true] %s243_s12 }
   0x9   :  { %v312_v11 = vld [vmem:[%s506_s0 + $0x14] sm:$0xf]  ;;  %v314_v15 = vld [vmem:[%s507_s1] sm:$0xff]  ;;  %v311_v17 = vld [vmem:[%s506_s0 + $0x4] sm:$0xf0]  ;;  %s241_s9 = sshll.u32 %s361_s8, 4  ;;  %s242_s9 = int_to_ptr.vmem [resolvable:$true] %s241_s9 }
   0xa   :  { %134 = vmatpush.bf16.msra.mxu0 %v319_v6  ;;  %326 = vmatpush.bf16.msra.mxu3 %v319_v6  ;;  %v267_v14 = vor.u32 %v312_v11, %v264_v12  ;;  %v254_v16 = vld [vmem:[%s506_s0] sm:$0xf]  ;;  %v262_v18 = vld [vmem:[%s506_s0 + $0x10] sm:$0xf]  ;;  %v313_v19 = vld [vmem:[%s506_s0 + $0x14] sm:$0xf0] }
   0xb   :  { %308 = vmatmul.msk.bf16.vlgmr.msra.gmra.mxu1 %vm125_vm0, %v259_v7  ;;  %v255_v20 = vor.u32 %v311_v17, %v254_v16  ;;  %v263_v21 = vor.u32 %v313_v19, %v262_v18  ;;  %v207_v22 = vld [vmem:[%s509_s3 + $0x78] sm:$0xff]  ;;  %v206_v23 = vld [vmem:[%s509_s3 + $0x70] sm:$0xff]  ;;  %v205_v24 = vld [vmem:[%s509_s3 + $0x68] sm:$0xff] }
   0xc   :  { %215 = vmatpush.msra.mxu2 %v207_v22  ;;  %v204_v25 = vld [vmem:[%s509_s3 + $0x60] sm:$0xff]  ;;  %v203_v26 = vld [vmem:[%s509_s3 + $0x58] sm:$0xff]  ;;  %v202_v27 = vld [vmem:[%s509_s3 + $0x50] sm:$0xff] }
   0xd   :  { %v201_v29 = vld [vmem:[%s509_s3 + $0x48] sm:$0xff]  ;;  %v200_v30 = vld [vmem:[%s509_s3 + $0x40] sm:$0xff]  ;;  %v199_v31 = vld [vmem:[%s509_s3 + $0x38] sm:$0xff] }
   0xe   :  { %135 = vmatpush.bf16.msra.mxu0 %v318_v8  ;;  %327 = vmatpush.bf16.msra.mxu3 %v318_v8  ;;  %v198_v32 = vld [vmem:[%s509_s3 + $0x30] sm:$0xff]  ;;  %v197_v33 = vld [vmem:[%s509_s3 + $0x28] sm:$0xff]  ;;  %v196_v34 = vld [vmem:[%s509_s3 + $0x20] sm:$0xff] }
   0xf   :  { %216 = vmatpush.msra.mxu2 %v206_v23  ;;  %v195_v36 = vld [vmem:[%s509_s3 + $0x18] sm:$0xff]  ;;  %v194_v37 = vld [vmem:[%s509_s3 + $0x10] sm:$0xff]  ;;  %v333_v38 = vld [vmem:[%s508_s2] ss:$0 sm:$0xff] }
  0x10   :  { %v193_v40 = vld [vmem:[%s509_s3 + $0x8] sm:$0xff]  ;;  %v192_v41 = vld [vmem:[%s509_s3] sm:$0xff]  ;;  %v45_v52 = vld [vmem:[%s508_s2 + $0x10] sm:$0xff] }
  0x11   :  { %217 = vmatpush.msra.mxu2 %v205_v24  ;;  %v44_v51 = vld [vmem:[%s508_s2 + $0x8] sm:$0xff]  ;;  %v334_v16 = vld [vmem:[%s509_s3 + $0x80] ss:$0 sm:$0xff] }
  0x12   :  { %136 = vmatpush.bf16.msra.mxu0 %v317_v9  ;;  %328 = vmatpush.bf16.msra.mxu3 %v317_v9 }
  0x13   :  { %218 = vmatpush.msra.mxu2 %v204_v25 }
  0x15   :  { %219 = vmatpush.msra.mxu2 %v203_v26 }
  0x16   :  { %137 = vmatpush.bf16.msra.mxu0 %v316_v10  ;;  %329 = vmatpush.bf16.msra.mxu3 %v316_v10 }
  0x17   :  { %220 = vmatpush.msra.mxu2 %v202_v27 }
  0x19   :  { %221 = vmatpush.msra.mxu2 %v201_v29 }
  0x1a   :  { %138 = vmatpush.bf16.msra.mxu0 %v315_v13  ;;  %330 = vmatpush.bf16.msra.mxu3 %v315_v13 }
  0x1b   :  { %309 = vmatmul.msk.bf16.gmra.mxu1 %vm125_vm0, %v267_v14  ;;  %222 = vmatpush.msra.mxu2 %v200_v30 }
  0x1d   :  { %223 = vmatpush.msra.mxu2 %v199_v31 }
  0x1e   :  { %139 = vmatpush.bf16.msra.mxu0 %v314_v15  ;;  %331 = vmatpush.bf16.msra.mxu3 %v314_v15 }
  0x1f   :  { %224 = vmatpush.msra.mxu2 %v198_v32 }
  0x21   :  { %140 = vmatmul.bf16.vlgmr.msra.gmra.mxu0 %v255_v20  ;;  %145 = vmatmul.bf16.vlgmr.msra.gmra.mxu3 %v263_v21 }
  0x22   :  { %225 = vmatpush.msra.mxu2 %v197_v33 }
  0x24   :  { %226 = vmatpush.msra.mxu2 %v196_v34 }
  0x26   :  { %227 = vmatpush.msra.mxu2 %v195_v36 }
  0x28   :  { %228 = vmatpush.msra.mxu2 %v194_v37 }
  0x2a   :  { %229 = vmatpush.msra.mxu2 %v193_v40 }
  0x2c   :  { %230 = vmatpush.msra.mxu2 %v192_v41 }
  0x88   :  { %v160_v28 = vpop.f32.mrf.mxu1 }
  0x90   :  { %v162_v35 = vpop.f32.mrf.mxu1 }
  0x98   :  { %v165_v43 = vpop.f32.mrf.mxu1 }
  0x9e   :  { %v141_v39 = vpop.f32.mrf.mxu0 }
  0x9f   :  { %v142_v42 = vadd.f32 %v333_v38, %v141_v39 }
  0xa0   :  { %v167_v59 = vpop.f32.mrf.mxu1 }
  0xa1   :  { %v161_v45 = vadd.f32 %v160_v28, %v142_v42 }
  0xa3   :  { %v170_v49 = vmax.f32 %v161_v45, 0.0 }
  0xa4   :  { %v146_v44 = vpop.f32.mrf.mxu3 }
  0xa5   :  { %v147_v47 = vadd.f32 %v333_v38, %v146_v44  ;;  %v174_v56 = vmul.f32 %v170_v49, %v44_v51 }
  0xa6   :  { %v143_v46 = vpop.f32.mrf.mxu0 }
  0xa7   :  { %v144_v48 = vadd.f32 %v333_v38, %v143_v46  ;;  %v166_v53 = vadd.f32 %v165_v43, %v147_v47 }
  0xa9   :  { %v163_v50 = vadd.f32 %v162_v35, %v144_v48  ;;  %v172_v60 = vmax.f32 %v166_v53, 0.0 }
  0xab   :  { %v171_v54 = vmax.f32 %v163_v50, 0.0  ;;  %v176_v1 = vmul.f32 %v172_v60, %v44_v51 }
  0xac   :  { %v148_v55 = vpop.f32.mrf.mxu3 }
  0xad   :  { %v175_v57 = vmul.f32 %v171_v54, %v45_v52  ;;  %v149_v58 = vadd.f32 %v333_v38, %v148_v55 }
  0xaf   :  { %v178_v61 = vmax.f32 %v174_v56, %v175_v57  ;;  %v168_v62 = vadd.f32 %v167_v59, %v149_v58 }
  0xb1   :  { %v179_v63 = vrot.slane %v178_v61, 4  ;;  %v173_v0 = vmax.f32 %v168_v62, 0.0 }
  0xb3   :  { %v177_v2 = vmul.f32 %v173_v0, %v45_v52  ;;  %v180_v3 = vmax.f32 %v178_v61, %v179_v63 }
  0xb5   :  { %v185_v4 = vmax.f32 %v176_v1, %v177_v2  ;;  %v181_v5 = vrot.slane %v180_v3, 2 }
  0xb7   :  { %v186_v6 = vrot.slane %v185_v4, 4  ;;  %v182_v7 = vmax.f32 %v180_v3, %v181_v5 }
  0xb9   :  { %v187_v8 = vmax.f32 %v185_v4, %v186_v6  ;;  %v183_v10 = vrot.slane %v182_v7, 1 }
  0xbb   :  { %v188_v9 = vrot.slane %v187_v8, 2  ;;  %v184_v13 = vmax.f32 %v182_v7, %v183_v10 }
  0xbd   :  { %v189_v11 = vmax.f32 %v187_v8, %v188_v9 }
  0xbf   :  { %v190_v12 = vrot.slane %v189_v11, 1 }
  0xc1   :  { %v191_v14 = vmax.f32 %v189_v11, %v190_v12 }
  0xc3   :  { %v213_v15 = vsel %vm212_vm1, %v191_v14, %v184_v13 }
  0xc4   :  { %231 = vmatmul.f32.vlgmr.msra.gmra.mxu2 %v213_v15 }
 0x147   :  { %v232_v17 = vpop.f32.mrf.mxu2 }
 0x148   :  { %v233_v18 = vadd.f32 %v334_v16, %v232_v17 }
 0x14a   :  { %235 = vst [vmem:[#allocation2] sm:$0x3] %v233_v18 }
 0x14b   :  { %246 = dma.vmem_to_hbm [thread:$0]  %s242_s9, 32, %s244_s12, [#allocation3]  }
 0x14c   :  { %359 = dma.done.wait [#allocation3], 32  }
 0x14d   :  { %360 = vsyncadd [#allocation3], 4294967264 }
 0x14e   :  { %251 = vsyncpa [#allocation3], 1 }

</bundles_post_ra>
